<compile_context>
chip_gen: v7x
topology: tpu7x:2x2x1
jax: 0.10.0
libtpu: 0.0.40
codegen_flags: <defaults>
</compile_context>

<pallas_src>
import functools

import jax
import jax.numpy as jnp
from jax import lax
from jax.experimental import pallas as pl
from jax.experimental.pallas import tpu as pltpu

_LANES = 128


def _round_up(x, m):
    return (x + m - 1) // m * m


def _choose_token_tile(m, h, in_bytes, out_cols):
    """Pick the token-tile (rows per grid step)."""
    if m <= 256:
        # Single full-extent tile (block == full array dim is always layout-legal).
        return m
    # Per-row bytes of the double-buffered pipeline slabs (x in + packed logits out);
    # cap the tile so the pipeline stays well under v7x's 64 MiB VMEM.
    per_row = 2 * (h * in_bytes + out_cols * 4)
    cap = min(2048, max(_LANES, (40 * 1024 * 1024 // per_row) // _LANES * _LANES))
    # v7x megacore: even number of grid steps >= 2 so both TensorCores get equal work;
    # on v5e/v6e (single TC) the extra step is one cheap (~0.35us) pipeline iteration.
    n_steps = pl.cdiv(m, cap)
    n_steps = max(2, n_steps + (n_steps % 2))
    return min(cap, _round_up(pl.cdiv(m, n_steps), _LANES))


def _spade_head_kernel(x_ref, w_ref, bc_ref, bs_ref, out_ref, *, num_labels):
    # x_ref : (TM, H)   token slab in its native dtype (cast to MXU dtype in-kernel)
    # w_ref : (H, OUT)  packed weights: cols [0,N)=classify, [N,N+S)=span, rest zero
    # bc_ref: (1, OUT)  f32, classify bias in cols [0,N), zero elsewhere
    # bs_ref: (1, OUT)  f32, span bias in cols [N,N+S), zero elsewhere
    # out_ref:(TM, OUT) f32 packed logits (classify cols then span cols; padding cols = 0)
    x = x_ref[...].astype(w_ref.dtype)

    # One MXU matmul produces both the classify and span pre-activations.
    y = jnp.dot(x, w_ref[...], preferred_element_type=jnp.float32)      # (TM, OUT) f32

    col = lax.broadcasted_iota(jnp.int32, (1, y.shape[-1]), 1)
    is_classify = col < num_labels                                       # (1, OUT)

    # logits_c[i, n] = y[i, n] + b_c[n]            (padded cols stay exactly 0)
    logits_c = y + bc_ref[...]
    # hidden = lhs * sum_n logits_c  =>  logits_s = scale * (x @ W_s) + b_s   (f32 scale)
    scale = jnp.sum(jnp.where(is_classify, logits_c, 0.0), axis=-1, keepdims=True)
    logits_s = scale * y + bs_ref[...]

    out_ref[...] = jnp.where(is_classify, logits_c, logits_s)


def layoutlm_spade_head(last_hidden_state, params, *, compute_dtype=jnp.bfloat16):
    """last_hidden_state: (B, T, H) -> (logits_c (B,T,N) f32, logits_s (B,T,S) f32)."""
    wc, bc = params["w_classify"], params["b_classify"]   # (H, N), (N,)
    ws, bs = params["w_span"], params["b_span"]           # (H, S), (S,)
    B, T, H = last_hidden_state.shape
    N = wc.shape[1]
    S = ws.shape[1]
    OUT = max(_LANES, _round_up(N + S, _LANES))           # packed lane-dense output width

    M = B * T
    in_bytes = jnp.dtype(last_hidden_state.dtype).itemsize
    comp_bytes = jnp.dtype(compute_dtype).itemsize
    TM = _choose_token_tile(M, H, in_bytes, OUT)
    grid = (pl.cdiv(M, TM),)

    # Free reshape only: no wrapper-side cast or pad of the activations (the kernel
    # casts per-tile; ragged last tile is clipped by Pallas at load/store).
    x = last_hidden_state.reshape(M, H)

    # Pack both linear layers into one (H, OUT) slab; zero columns keep padded logits 0.
    w_packed = jnp.pad(jnp.concatenate([wc, ws], axis=1),
                       ((0, 0), (0, OUT - N - S))).astype(compute_dtype)
    bc_p = jnp.pad(bc.astype(jnp.float32), (0, OUT - N)).reshape(1, OUT)
    bs_p = jnp.pad(bs.astype(jnp.float32), (N, OUT - N - S)).reshape(1, OUT)

    # Advisory cost estimate for the fused single-matmul kernel.
    flops = 2 * M * H * OUT + 6 * M * OUT
    bytes_accessed = (M * H * in_bytes            # activations read (native dtype)
                      + H * OUT * comp_bytes      # packed weights
                      + 2 * OUT * 4               # biases
                      + M * OUT * 4)              # packed f32 logits writeback

    # VMEM: double-buffered x/out pipeline + resident weights + in-kernel temporaries.
    pipeline_bytes = 2 * TM * (H * in_bytes + OUT * 4)
    resident_bytes = 2 * (H * OUT * comp_bytes + 2 * OUT * 4)
    scratch_bytes = TM * (H * comp_bytes + 4 * OUT * 4)
    vmem_limit = int(min(max(pipeline_bytes + resident_bytes + scratch_bytes + (2 << 20),
                             8 << 20), 64 << 20))

    out_packed = pl.pallas_call(
        functools.partial(_spade_head_kernel, num_labels=N),
        out_shape=jax.ShapeDtypeStruct((M, OUT), jnp.float32),
        grid_spec=pltpu.PrefetchScalarGridSpec(
            num_scalar_prefetch=0,
            grid=grid,
            in_specs=[
                pl.BlockSpec((TM, H), lambda m: (m, 0)),      # token slab
                pl.BlockSpec((H, OUT), lambda m: (0, 0)),     # packed weights (resident)
                pl.BlockSpec((1, OUT), lambda m: (0, 0)),     # classify bias (resident)
                pl.BlockSpec((1, OUT), lambda m: (0, 0)),     # span bias (resident)
            ],
            out_specs=pl.BlockSpec((TM, OUT), lambda m: (m, 0)),
        ),
        compiler_params=pltpu.CompilerParams(
            dimension_semantics=("parallel",),
            vmem_limit_bytes=vmem_limit,
        ),
        cost_estimate=pl.CostEstimate(flops=int(flops), transcendentals=0,
                                      bytes_accessed=int(bytes_accessed)),
    )(x, w_packed, bc_p, bs_p)

    logits_c = out_packed[:, :N].reshape(B, T, N)
    logits_s = out_packed[:, N:N + S].reshape(B, T, S)
    return logits_c, logits_s


def _cross_entropy(logits, labels):
    # Plain-JAX CE (PyTorch-style mean, ignore_index=-100). Not a Pallas kernel.
    logits = logits.reshape(-1, logits.shape[-1]).astype(jnp.float32)
    labels = labels.reshape(-1)
    valid = labels != -100
    safe = jnp.where(valid, labels, 0)
    logz = jax.nn.logsumexp(logits, axis=-1)
    picked = jnp.take_along_axis(logits, safe[:, None], axis=-1)[:, 0]
    nll = jnp.where(valid, logz - picked, 0.0)
    return nll.sum() / jnp.maximum(valid.sum(), 1)


def layoutlm_spade_forward(last_hidden_state, params, labels_c=None, labels_s=None):
    """Mirrors LayoutLMSpade.forward() downstream of the backbone."""
    logits_c, logits_s = layoutlm_spade_head(last_hidden_state, params)
    loss = jnp.float32(0.0)
    if labels_c is not None:
        loss = loss + _cross_entropy(logits_c, labels_c)
    if labels_s is not None:
        loss = loss + _cross_entropy(logits_s, labels_s)
    return {"loss": loss, "logits_c": logits_c, "logits_s": logits_s}


def init_params(key, hidden_size, num_labels, num_span_labels=5):
    # nn.Linear(hidden, out): weight (out, in), bias (out,). Stored transposed (in, out)
    # so the kernel's matmul is plain row-major.
    k1, k2, k3, k4 = jax.random.split(key, 4)
    bound = 1.0 / jnp.sqrt(jnp.float32(hidden_size))
    wc = jax.random.uniform(k1, (hidden_size, num_labels), jnp.float32, -bound, bound)
    bc = jax.random.uniform(k2, (num_labels,), jnp.float32, -bound, bound)
    ws = jax.random.uniform(k3, (hidden_size, num_span_labels), jnp.float32, -bound, bound)
    bs = jax.random.uniform(k4, (num_span_labels,), jnp.float32, -bound, bound)
    return {"w_classify": wc, "b_classify": bc, "w_span": ws, "b_span": bs}


if __name__ == "__main__":
    # Small shapes consistent with the module (hidden_size scaled down for the demo;
    # num_span_labels is hard-coded to 5 in the module).
    B, T, H = 2, 16, 32
    num_labels = 7
    num_span_labels = 5

    key = jax.random.PRNGKey(0)
    kp, kx = jax.random.split(key)
    params = init_params(kp, H, num_labels, num_span_labels)
    # Stand-in for backbone(...).last_hidden_state
    lhs = jax.random.normal(kx, (B, T, H), jnp.float32)

    out = layoutlm_spade_forward(lhs, params)
    logits_c = jax.block_until_ready(out["logits_c"])
    logits_s = jax.block_until_ready(out["logits_s"])

    # Pure-JAX f32 reference (same semantics as the torch forward, dropout = identity).
    ref_c = jnp.einsum("bth,hn->btn", lhs, params["w_classify"]) + params["b_classify"]
    ref_hidden = lhs * jnp.sum(ref_c, axis=-1, keepdims=True)   # einsum('bih,bin->bih')
    ref_s = jnp.einsum("bth,hs->bts", ref_hidden, params["w_span"]) + params["b_span"]

    assert logits_c.shape == (B, T, num_labels)
    assert logits_s.shape == (B, T, num_span_labels)
    # bf16 MXU inputs with f32 accumulation -> loosened tolerance vs the f32 reference.
    assert jnp.allclose(logits_c, ref_c, atol=5e-2, rtol=5e-2)
    assert jnp.allclose(logits_s, ref_s, atol=5e-2, rtol=5e-2)

    print("KERNEL_OK")
</pallas_src>

<mosaic_0001>
module attributes {stable_mosaic.version = 11 : i64} {
  func.func @_spade_head_kernel(%arg0: i32, %arg1: memref<32x32xf32, #tpu.memory_space<vmem>>, %arg2: memref<32x128xbf16, #tpu.memory_space<vmem>>, %arg3: memref<1x128xf32, #tpu.memory_space<vmem>>, %arg4: memref<1x128xf32, #tpu.memory_space<vmem>>, %arg5: memref<32x128xf32, #tpu.memory_space<vmem>>) attributes {dimension_semantics = [#tpu.dimension_semantics<parallel>], iteration_bounds = array<i64: 1>, scalar_prefetch = 0 : i64, scratch_operands = 0 : i64, tpu.core_type = #tpu.core_type<tc>, window_params = [{transform_indices = @transform_0, window_bounds = array<i64: 32, 32>}, {pipeline_mode = #tpu.pipeline_mode<synchronous>, transform_indices = @transform_1, window_bounds = array<i64: 32, 128>}, {pipeline_mode = #tpu.pipeline_mode<synchronous>, transform_indices = @transform_2, window_bounds = array<i64: 1, 128>}, {pipeline_mode = #tpu.pipeline_mode<synchronous>, transform_indices = @transform_3, window_bounds = array<i64: 1, 128>}, {transform_indices = @transform_4, window_bounds = array<i64: 32, 128>}]} {
    %c0 = arith.constant 0 : index
    %c0_0 = arith.constant 0 : index
    %0 = vector.load %arg1[%c0, %c0_0] : memref<32x32xf32, #tpu.memory_space<vmem>>, vector<32x32xf32>
    %1 = arith.truncf %0 : vector<32x32xf32> to vector<32x32xbf16>
    %c0_1 = arith.constant 0 : index
    %c0_2 = arith.constant 0 : index
    %2 = vector.load %arg2[%c0_1, %c0_2] : memref<32x128xbf16, #tpu.memory_space<vmem>>, vector<32x128xbf16>
    %cst = arith.constant dense<0.000000e+00> : vector<32x128xf32>
    %3 = tpu.matmul %1, %2, %cst {dimension_numbers = #tpu.dot_dimension_numbers<[1], [0], [0], [1], [0, 0, 1, 1], [], []>} : vector<32x32xbf16>, vector<32x128xbf16>, vector<32x128xf32> -> vector<32x128xf32>
    %4 = tpu.iota {dimensions = array<i32: 1>} : vector<1x128xi32>
    %c7_i32 = arith.constant 7 : i32
    %5 = vector.broadcast %c7_i32 : i32 to vector<1x128xi32>
    %6 = arith.cmpi slt, %4, %5 : vector<1x128xi32>
    %c0_3 = arith.constant 0 : index
    %c0_4 = arith.constant 0 : index
    %7 = vector.load %arg3[%c0_3, %c0_4] : memref<1x128xf32, #tpu.memory_space<vmem>>, vector<1x128xf32>
    %8 = vector.broadcast %7 : vector<1x128xf32> to vector<32x128xf32>
    %9 = arith.addf %3, %8 : vector<32x128xf32>
    %cst_5 = arith.constant 0.000000e+00 : f32
    %10 = vector.shape_cast %6 : vector<1x128xi1> to vector<1x128xi1>
    %11 = vector.broadcast %10 : vector<1x128xi1> to vector<32x128xi1>
    %12 = vector.broadcast %cst_5 : f32 to vector<32x128xf32>
    %13 = arith.select %11, %9, %12 : vector<32x128xi1>, vector<32x128xf32>
    %cst_6 = arith.constant dense<0.000000e+00> : vector<32xf32>
    %14 = vector.multi_reduction <add>, %13, %cst_6 [1] : vector<32x128xf32> to vector<32xf32>
    %15 = vector.shape_cast %14 : vector<32xf32> to vector<32x1xf32>
    %16 = vector.broadcast %15 : vector<32x1xf32> to vector<32x128xf32>
    %17 = arith.mulf %16, %3 : vector<32x128xf32>
    %c0_7 = arith.constant 0 : index
    %c0_8 = arith.constant 0 : index
    %18 = vector.load %arg4[%c0_7, %c0_8] : memref<1x128xf32, #tpu.memory_space<vmem>>, vector<1x128xf32>
    %19 = vector.broadcast %18 : vector<1x128xf32> to vector<32x128xf32>
    %20 = arith.addf %17, %19 : vector<32x128xf32>
    %21 = vector.shape_cast %6 : vector<1x128xi1> to vector<1x128xi1>
    %22 = vector.broadcast %21 : vector<1x128xi1> to vector<32x128xi1>
    %23 = arith.select %22, %9, %20 : vector<32x128xi1>, vector<32x128xf32>
    %c0_9 = arith.constant 0 : index
    %c0_10 = arith.constant 0 : index
    %24 = vector.load %arg5[%c0_9, %c0_10] : memref<32x128xf32, #tpu.memory_space<vmem>>, vector<32x128xf32>
    tpu.vector_store %arg5[%c0_9, %c0_10], %23 {strides = array<i32>} : memref<32x128xf32, #tpu.memory_space<vmem>>, vector<32x128xf32>,
    return
  }
  func.func @transform_0(%arg0: i32) -> (i32, i32) {
    %c0_i32 = arith.constant 0 : i32
    %c0_i32_0 = arith.constant 0 : i32
    return %arg0, %c0_i32 : i32, i32
  }
  func.func @transform_1(%arg0: i32) -> (i32, i32) {
    %c0_i32 = arith.constant 0 : i32
    %c0_i32_0 = arith.constant 0 : i32
    %c0_i32_1 = arith.constant 0 : i32
    return %c0_i32, %c0_i32_0 : i32, i32
  }
  func.func @transform_2(%arg0: i32) -> (i32, i32) {
    %c0_i32 = arith.constant 0 : i32
    %c0_i32_0 = arith.constant 0 : i32
    %c0_i32_1 = arith.constant 0 : i32
    return %c0_i32, %c0_i32_0 : i32, i32
  }
  func.func @transform_3(%arg0: i32) -> (i32, i32) {
    %c0_i32 = arith.constant 0 : i32
    %c0_i32_0 = arith.constant 0 : i32
    %c0_i32_1 = arith.constant 0 : i32
    return %c0_i32, %c0_i32_0 : i32, i32
  }
  func.func @transform_4(%arg0: i32) -> (i32, i32) {
    %c0_i32 = arith.constant 0 : i32
    %c0_i32_0 = arith.constant 0 : i32
    return %arg0, %c0_i32 : i32, i32
  }
}

</mosaic_0001>

<bundles_post_ra>
// kernel: tpu_custom_call.1
= control target key start
LH: loop header
LB: loop body
LE: loop exit
PB: predicated region body
PF: predicated region fallthrough
CT: control target
= control target key end

     0   :  { %9 = vsyncpa [#allocation3], 0  ;;  %s381_s0 = inlined_call_operand.hbm [shape: f32[32,32], index: 0, kind: input, shape index: {}]   ;;  %s382_s1 = inlined_call_operand.hbm [shape: bf16[32,128], index: 1, kind: input, shape index: {}]   ;;  %s383_s2 = inlined_call_operand.vmem [shape: f32[1,128], index: 2, kind: input, shape index: {}]   ;;  %s384_s3 = inlined_call_operand.vmem [shape: f32[1,128], index: 3, kind: input, shape index: {}]   ;;  %s385_s4 = inlined_call_operand.hbm [shape: f32[32,128], index: 4, kind: output, shape index: {}]  }
   0x1   :  { %10 = vsyncpa [#allocation6], 0 }
   0x2   :  { %11 = vsyncpa [#allocation4], 0  ;;  %s293_s15 = smov [#allocation2]   ;;  %s221_s19 = scalar_lea.hbm %s381_s0, 512 }
   0x3   :  { %s17_s16 = sshll.u32 %s293_s15, 4  ;;  %p222_p0 = scmp.ne.s32.totalorder %s381_s0, %s221_s19  ;;  %s18_s16 = int_to_ptr.vmem [resolvable:$true] %s17_s16 }
   0x4   :  { %p225_p1 = scmp.lt.u32.totalorder %s221_s19, %s381_s0 }
   0x6   :  { %p227_p2 = pnand %p225_p1, %p222_p0 }
   0x8   :  { %230 = shalt.err (!%p227_p2)
}
   0x9   :  { %s231_s24 = scalar_lea.vmem %s18_s16, 512  ;;  %p236_p4 = scmp.lt.s32.totalorder %s18_s16, %s18_s16 }
   0xa   :  { %p232_p3 = scmp.ne.s32.totalorder %s18_s16, %s231_s24  ;;  %p237_p5 = scmp.lt.s32.totalorder %s231_s24, %s231_s24 }
   0xc   :  { %p238_p6 = por %p237_p5, %p236_p4 }
   0xe   :  { %p239_p7 = pnand %p238_p6, %p232_p3 }
  0x10   :  { %242 = shalt.err (!%p239_p7)
}
  0x11   :  { %s294_s25 = smov 128   ;;  %s295_s26 = smov 8  }
  0x12   :  { %23 = dma.hbm_to_vmem [thread:$0]  %s381_s0, 512, %s18_s16, [#allocation3], %s294_s25, %s294_s25, %s295_s26  }
  0x13   :  { %s296_s29 = smov [#allocation5]   ;;  %s243_s7 = scalar_lea.hbm %s382_s1, 256 }
  0x14   :  { %s29_s30 = sshll.u32 %s296_s29, 4  ;;  %p244_p8 = scmp.ne.s32.totalorder %s382_s1, %s243_s7  ;;  %s30_s30 = int_to_ptr.vmem [resolvable:$true] %s29_s30 }
  0x15   :  { %p247_p9 = scmp.lt.u32.totalorder %s243_s7, %s382_s1 }
  0x17   :  { %p249_p10 = pnand %p247_p9, %p244_p8 }
  0x19   :  { %252 = shalt.err (!%p249_p10)
}
  0x1a   :  { %s253_s12 = scalar_lea.vmem %s30_s30, 256  ;;  %p258_p12 = scmp.lt.s32.totalorder %s30_s30, %s30_s30 }
  0x1b   :  { %p254_p11 = scmp.ne.s32.totalorder %s30_s30, %s253_s12  ;;  %p259_p13 = scmp.lt.s32.totalorder %s253_s12, %s253_s12 }
  0x1d   :  { %p260_p0 = por %p259_p13, %p258_p12 }
  0x1f   :  { %p261_p1 = pnand %p260_p0, %p254_p11 }
  0x21   :  { %264 = shalt.err (!%p261_p1)
}
  0x22   :  { %s297_s0 = smov 64   ;;  %s298_s13 = smov 4  }
  0x23   :  { %35 = dma.hbm_to_vmem [thread:$0]  %s382_s1, 256, %s30_s30, [#allocation6], %s297_s0, %s297_s0, %s298_s13  }
  0x24   :  { %287 = dma.done.wait [#allocation3], 512  }
  0x25   :  { %288 = vsyncadd [#allocation3], 4294966784 }
  0x26   :  { %289 = dma.done.wait [#allocation6], 256  }
  0x27   :  { %290 = vsyncadd [#allocation6], 4294967040  ;;  %v219_v0 = vld [vmem:[#allocation5] sm:$0xff]   ;;  %v220_v1 = vld [vmem:[#allocation5 + $0x8] sm:$0xff]   ;;  %vm69_vm0 = vcmask 261120   ;;  %v125_v8 = vlaneseq  ;;  %s299_s18 = smov [#allocation7]  }
  0x28   :  { %204 = vmatprep.subr.bf16.mxu0 %v219_v0  ;;  %v47_v2 = vld [vmem:[#allocation2] sm:$0xff]  ;;  %v48_v3 = vld [vmem:[#allocation2 + $0x8] sm:$0xff]  ;;  %v49_v5 = vld [vmem:[#allocation2 + $0x10] sm:$0xff]  ;;  %s181_s19 = sshll.u32 %s299_s18, 4  ;;  %s182_s19 = int_to_ptr.vmem [resolvable:$true] %s181_s19 }
  0x29   :  { %205 = vmatpush3.bf16.msra.mxu0 %v219_v0  ;;  %v51_v4 = vpack.c.bf16 %v48_v3, %v47_v2  ;;  %v50_v6 = vld [vmem:[#allocation2 + $0x18] sm:$0xff]  ;;  %v126_v9 = vand.u32 127, %v125_v8  ;;  %v198_v10 = vld [vmem:[%s383_s2] ss:$0 sm:$0xff]  ;;  %p270_p3 = scmp.lt.s32.totalorder %s182_s19, %s182_s19 }
  0x2a   :  { %206 = vmatprep.subr.bf16.mxu0 %v220_v1  ;;  %v52_v7 = vpack.c.bf16 %v50_v6, %v49_v5  ;;  %v199_v23 = vld [vmem:[%s384_s3] ss:$0 sm:$0xff]  ;;  %s265_s3 = scalar_lea.vmem %s182_s19, 512 }
  0x2b   :  { %208 = vmatprep.mubr.msk.bf16.mxu0 %vm69_vm0, %v51_v4  ;;  %vm127_vm1 = vcmp.lt.s32.totalorder %v126_v9, 7  ;;  %p266_p2 = scmp.ne.s32.totalorder %s182_s19, %s265_s3  ;;  %p271_p4 = scmp.lt.s32.totalorder %s265_s3, %s265_s3 }
  0x2d   :  { %207 = vmatpush3.bf16.msra.mxu0 %v220_v1  ;;  %p272_p5 = por %p271_p4, %p270_p3 }
  0x2f   :  { %p273_p6 = pnand %p272_p5, %p266_p2 }
  0x30   :  { %209 = vmatmul.mubr.msk.bf16.vlgmr.msra.gmra.mrb[0].mxu0 %vm69_vm0, %v52_v7 }
 0x103   :  { %v210_v11 = vpop.f32.mrb[0].mxu0 }
 0x104   :  { %v110_v12 = vpop.f32.mrb[1].mxu0  ;;  %v137_v13 = vadd.f32 %v210_v11, %v198_v10 }
 0x105   :  { %v211_v14 = vpop.f32.mrb[2].mxu0  ;;  %v135_v15 = vadd.f32 %v198_v10, %v110_v12 }
 0x106   :  { %v138_v16 = vadd.f32 %v211_v14, %v198_v10  ;;  %v113_v17 = vpop.f32.mrb[3].mxu0  ;;  %v143_v18 = vsel %vm127_vm1, %v137_v13, 0.0 }
 0x107   :  { %v136_v19 = vadd.f32 %v198_v10, %v113_v17  ;;  %149 = vadd.xlane.f32.xlu1 %v143_v18  ;;  %v141_v20 = vsel %vm127_vm1, %v135_v15, 0.0 }
 0x108   :  { %145 = vadd.xlane.f32.xlu0 %v141_v20  ;;  %v144_v21 = vsel %vm127_vm1, %v138_v16, 0.0 }
 0x109   :  { %v142_v22 = vsel %vm127_vm1, %v136_v19, 0.0 }
 0x10b   :  { %151 = vadd.xlane.f32.xlu1 %v144_v21 }
 0x10c   :  { %147 = vadd.xlane.f32.xlu0 %v142_v22 }
 0x194   :  { %v150_v24 = vpop.xlane.xlu1 %149 }
 0x195   :  { %v155_v25 = vmul.f32 %v210_v11, %v150_v24  ;;  %v146_v26 = vpop.xlane.xlu0 %145 }
 0x196   :  { %v153_v27 = vmul.f32 %v146_v26, %v110_v12 }
 0x197   :  { %v166_v28 = vadd.f32 %v199_v23, %v155_v25 }
 0x198   :  { %v164_v29 = vadd.f32 %v199_v23, %v153_v27  ;;  %v152_v30 = vpop.xlane.xlu1 %151 }
 0x199   :  { %v170_v31 = vsel %vm127_vm1, %v137_v13, %v166_v28  ;;  %v156_v32 = vmul.f32 %v211_v14, %v152_v30  ;;  %v148_v33 = vpop.xlane.xlu0 %147 }
 0x19a   :  { %174 = vst [vmem:[#allocation7 + $0x10] sm:$0xff] %v170_v31  ;;  %v168_v34 = vsel %vm127_vm1, %v135_v15, %v164_v29  ;;  %v154_v35 = vmul.f32 %v148_v33, %v113_v17 }
 0x19b   :  { %172 = vst [vmem:[#allocation7] sm:$0xff] %v168_v34  ;;  %v167_v36 = vadd.f32 %v199_v23, %v156_v32 }
 0x19c   :  { %v165_v37 = vadd.f32 %v199_v23, %v154_v35 }
 0x19d   :  { %v171_v38 = vsel %vm127_vm1, %v138_v16, %v167_v36 }
 0x19e   :  { %175 = vst [vmem:[#allocation7 + $0x18] sm:$0xff] %v171_v38  ;;  %v169_v39 = vsel %vm127_vm1, %v136_v19, %v165_v37 }
 0x19f   :  { %173 = vst [vmem:[#allocation7 + $0x8] sm:$0xff] %v169_v39 }
 0x1a0   :  { %276 = shalt.err (!%p273_p6)
}
 0x1a1   :  { %s277_s22 = scalar_lea.hbm %s385_s4, 512 }
 0x1a2   :  { %p278_p7 = scmp.ne.s32.totalorder %s385_s4, %s277_s22  ;;  %p281_p8 = scmp.lt.u32.totalorder %s277_s22, %s385_s4 }
 0x1a4   :  { %p283_p9 = pnand %p281_p8, %p278_p7 }
 0x1a6   :  { %286 = shalt.err (!%p283_p9)
}
 0x1a7   :  { %187 = dma.vmem_to_hbm [thread:$0]  %s182_s19, 512, %s385_s4, [#allocation4], %s294_s25, %s294_s25, %s295_s26  }
 0x1a8   :  { %291 = dma.done.wait [#allocation4], 512  }
 0x1a9   :  { %292 = vsyncadd [#allocation4], 4294966784 }
 0x1aa   :  { %191 = vsyncpa [#allocation3], 1 }
 0x1ab   :  { %192 = vsyncpa [#allocation6], 1 }
 0x1ac   :  { %193 = vsyncpa [#allocation4], 1 }

</bundles_post_ra>
